<compile_context>
chip_gen: v6e
topology: v6e:2x2x1
jax: 0.10.0
libtpu: 0.0.40
codegen_flags: <defaults>
</compile_context>

<pallas_src>
import jax
import jax.numpy as jnp
from jax import lax
from jax.experimental import pallas as pl
from jax.experimental.pallas import tpu as pltpu
import numpy as np

NUM_QUBITS_AFTER_TRANSPILE = 4
INPUT_SIZE = NUM_QUBITS_AFTER_TRANSPILE * 5   # 20
HIDDEN = 64
N_STATES = 16
FC1 = 128
FC2 = 64


def _lstm_mlp_kernel(pre_ref, whh_t_ref, w1_t_ref, b1_ref, w2_t_ref, b2_ref,
                     w3_t_ref, b3_ref, out_ref):
    T, B = pre_ref.shape[0], pre_ref.shape[1]
    H = HIDDEN

    # Hoist loop-invariant load: (H, 4H) f32 = 64 KiB (~16 vregs).
    whh_t = whh_t_ref[...]

    def step(t, carry):
        h, c = carry
        # gates: (B, 4H), columns packed as [i | f | o | g]; bias already folded in.
        gates = pre_ref[t] + jnp.dot(h, whh_t, preferred_element_type=jnp.float32)
        sig = jax.nn.sigmoid(gates[:, :3 * H])       # one contiguous 192-lane sigmoid
        g_g = jnp.tanh(gates[:, 3 * H:])             # trailing 64-lane tanh
        i_g = sig[:, 0 * H:1 * H]
        f_g = sig[:, 1 * H:2 * H]
        o_g = sig[:, 2 * H:3 * H]
        c_new = f_g * c + i_g * g_g
        h_new = o_g * jnp.tanh(c_new)
        return (h_new, c_new)

    h0 = jnp.zeros((B, H), jnp.float32)
    c0 = jnp.zeros((B, H), jnp.float32)
    h, _ = lax.fori_loop(0, T, step, (h0, c0), unroll=True)

    # MLP head on the last hidden state (dropout = identity at inference).
    y = jnp.dot(h, w1_t_ref[...], preferred_element_type=jnp.float32) + b1_ref[...]
    y = jnp.dot(y, w2_t_ref[...], preferred_element_type=jnp.float32) + b2_ref[...]
    y = jnp.dot(y, w3_t_ref[...], preferred_element_type=jnp.float32) + b3_ref[...]
    out_ref[...] = y.astype(out_ref.dtype)


def enhanced_rnn_forward(x, params):
    """x: (B, T, Q, 5) float32.  Returns (B, N_STATES)."""
    B, T = x.shape[0], x.shape[1]
    x_flat = x.reshape(B, T, -1).astype(jnp.float32)        # (B, T, I)

    (w_ih, w_hh, b_ih, b_hh, w1, b1, w2, b2, w3, b3) = params
    H = HIDDEN

    # Repack PyTorch gate row blocks [i, f, g, o] -> [i, f, o, g] so the three sigmoid
    # gates form one contiguous 192-lane slice inside the kernel.
    perm = jnp.concatenate([jnp.arange(0, H), jnp.arange(H, 2 * H),
                            jnp.arange(3 * H, 4 * H), jnp.arange(2 * H, 3 * H)])
    w_ih_p = w_ih[perm]                                     # (4H, I)
    w_hh_p = w_hh[perm]                                     # (4H, H)
    b_p = (b_ih + b_hh)[perm]                               # (4H,)

    # Precompute the input projection for ALL timesteps in one matmul, directly in
    # time-major (T, B, 4H) layout (no separate transpose pass over x).
    pre_gates = (jnp.einsum('bti,gi->tbg', x_flat, w_ih_p) + b_p).astype(jnp.float32)

    whh_t = w_hh_p.T                                        # (H, 4H)
    w1_t = w1.T                                             # (H, 128)
    w2_t = w2.T                                             # (128, 64)
    w3_t = w3.T                                             # (64, 16)
    b1r = b1.reshape(1, -1)
    b2r = b2.reshape(1, -1)
    b3r = b3.reshape(1, -1)

    # No grid: a single kernel invocation with every operand resident in VMEM.
    vmem = pl.BlockSpec(memory_space=pltpu.MemorySpace.VMEM)
    out = pl.pallas_call(
        _lstm_mlp_kernel,
        out_shape=jax.ShapeDtypeStruct((B, N_STATES), jnp.float32),
        in_specs=[vmem] * 8,
        out_specs=vmem,
    )(pre_gates, whh_t, w1_t, b1r, w2_t, b2r, w3_t, b3r)
    return out


def init_params(key):
    """Deterministic synthetic parameters matching nn.LSTM / nn.Linear shapes."""
    ks = jax.random.split(key, 10)
    k = 1.0 / np.sqrt(HIDDEN)
    u = lambda kk, shape, scale: jax.random.uniform(kk, shape, jnp.float32, -scale, scale)
    w_ih = u(ks[0], (4 * HIDDEN, INPUT_SIZE), k)
    w_hh = u(ks[1], (4 * HIDDEN, HIDDEN), k)
    b_ih = u(ks[2], (4 * HIDDEN,), k)
    b_hh = u(ks[3], (4 * HIDDEN,), k)
    w1 = u(ks[4], (FC1, HIDDEN), 1.0 / np.sqrt(HIDDEN))
    b1 = u(ks[5], (FC1,), 1.0 / np.sqrt(HIDDEN))
    w2 = u(ks[6], (FC2, FC1), 1.0 / np.sqrt(FC1))
    b2 = u(ks[7], (FC2,), 1.0 / np.sqrt(FC1))
    w3 = u(ks[8], (N_STATES, FC2), 1.0 / np.sqrt(FC2))
    b3 = u(ks[9], (N_STATES,), 1.0 / np.sqrt(FC2))
    return (w_ih, w_hh, b_ih, b_hh, w1, b1, w2, b2, w3, b3)


def reference_forward(x, params):
    """Pure-JAX reference mirroring the PyTorch forward (for correctness check)."""
    (w_ih, w_hh, b_ih, b_hh, w1, b1, w2, b2, w3, b3) = params
    B, T = x.shape[0], x.shape[1]
    xf = x.reshape(B, T, -1)
    h = jnp.zeros((B, HIDDEN), jnp.float32)
    c = jnp.zeros((B, HIDDEN), jnp.float32)

    def step(carry, x_t):
        h, c = carry
        g = x_t @ w_ih.T + h @ w_hh.T + b_ih + b_hh
        i = jax.nn.sigmoid(g[:, 0:HIDDEN])
        f = jax.nn.sigmoid(g[:, HIDDEN:2 * HIDDEN])
        gg = jnp.tanh(g[:, 2 * HIDDEN:3 * HIDDEN])
        o = jax.nn.sigmoid(g[:, 3 * HIDDEN:4 * HIDDEN])
        c = f * c + i * gg
        h = o * jnp.tanh(c)
        return (h, c), None

    (h, c), _ = jax.lax.scan(step, (h, c), jnp.transpose(xf, (1, 0, 2)))
    y = h @ w1.T + b1
    y = y @ w2.T + b2
    y = y @ w3.T + b3
    return y


if __name__ == "__main__":
    key = jax.random.PRNGKey(0)
    kx, kp = jax.random.split(key)
    B, T = 8, 8   # B = one full sublane; still a small example shape
    x = jax.random.normal(kx, (B, T, NUM_QUBITS_AFTER_TRANSPILE, 5), jnp.float32)
    params = init_params(kp)

    fwd = jax.jit(enhanced_rnn_forward)
    out = jax.block_until_ready(fwd(x, params))

    ref = reference_forward(x, params)
    assert out.shape == (B, N_STATES)
    assert jnp.allclose(out, ref, atol=1e-4, rtol=1e-4), "mismatch vs pure-JAX reference"
    print("KERNEL_OK")
</pallas_src>

<mosaic_0001>
module attributes {stable_mosaic.version = 11 : i64} {
  func.func @_lstm_mlp_kernel(%arg0: memref<8x8x256xf32, #tpu.memory_space<vmem>>, %arg1: memref<64x256xf32, #tpu.memory_space<vmem>>, %arg2: memref<64x128xf32, #tpu.memory_space<vmem>>, %arg3: memref<1x128xf32, #tpu.memory_space<vmem>>, %arg4: memref<128x64xf32, #tpu.memory_space<vmem>>, %arg5: memref<1x64xf32, #tpu.memory_space<vmem>>, %arg6: memref<64x16xf32, #tpu.memory_space<vmem>>, %arg7: memref<1x16xf32, #tpu.memory_space<vmem>>, %arg8: memref<8x16xf32, #tpu.memory_space<vmem>>) attributes {dimension_semantics = [], scalar_prefetch = 0 : i64, scratch_operands = 0 : i64, tpu.core_type = #tpu.core_type<tc>} {
    %c0 = arith.constant 0 : index
    %c0_0 = arith.constant 0 : index
    %0 = vector.load %arg1[%c0, %c0_0] : memref<64x256xf32, #tpu.memory_space<vmem>>, vector<64x256xf32>
    %cst = arith.constant 0.000000e+00 : f32
    %1 = vector.broadcast %cst : f32 to vector<8x64xf32>
    %cst_1 = arith.constant 0.000000e+00 : f32
    %2 = vector.broadcast %cst_1 : f32 to vector<8x64xf32>
    %c0_i32 = arith.constant 0 : i32
    %3 = arith.index_cast %c0_i32 : i32 to index
    %c0_2 = arith.constant 0 : index
    %c0_3 = arith.constant 0 : index
    %4 = vector.load %arg0[%3, %c0_2, %c0_3] : memref<8x8x256xf32, #tpu.memory_space<vmem>>, vector<1x8x256xf32>
    %5 = vector.shape_cast %4 : vector<1x8x256xf32> to vector<8x256xf32>
    %cst_4 = arith.constant dense<0.000000e+00> : vector<8x256xf32>
    %6 = tpu.matmul %1, %0, %cst_4 {dimension_numbers = #tpu.dot_dimension_numbers<[1], [0], [0], [1], [0, 0, 1, 1], [], []>} : vector<8x64xf32>, vector<64x256xf32>, vector<8x256xf32> -> vector<8x256xf32>
    %7 = arith.addf %5, %6 : vector<8x256xf32>
    %8 = vector.extract_strided_slice %7 {offsets = [0, 0], sizes = [8, 192], strides = [1, 1]} : vector<8x256xf32> to vector<8x192xf32>
    %9 = arith.negf %8 : vector<8x192xf32>
    %10 = math.exp %9 : vector<8x192xf32>
    %cst_5 = arith.constant 1.000000e+00 : f32
    %11 = vector.broadcast %cst_5 : f32 to vector<8x192xf32>
    %12 = arith.addf %11, %10 : vector<8x192xf32>
    %13 = arith.divf %11, %12 : vector<8x192xf32>
    %14 = vector.extract_strided_slice %7 {offsets = [0, 192], sizes = [8, 64], strides = [1, 1]} : vector<8x256xf32> to vector<8x64xf32>
    %15 = math.tanh %14 : vector<8x64xf32>
    %16 = vector.extract_strided_slice %13 {offsets = [0, 0], sizes = [8, 64], strides = [1, 1]} : vector<8x192xf32> to vector<8x64xf32>
    %17 = vector.extract_strided_slice %13 {offsets = [0, 64], sizes = [8, 64], strides = [1, 1]} : vector<8x192xf32> to vector<8x64xf32>
    %18 = vector.extract_strided_slice %13 {offsets = [0, 128], sizes = [8, 64], strides = [1, 1]} : vector<8x192xf32> to vector<8x64xf32>
    %19 = arith.mulf %17, %2 : vector<8x64xf32>
    %20 = arith.mulf %16, %15 : vector<8x64xf32>
    %21 = arith.addf %19, %20 : vector<8x64xf32>
    %22 = math.tanh %21 : vector<8x64xf32>
    %23 = arith.mulf %18, %22 : vector<8x64xf32>
    %c1_i32 = arith.constant 1 : i32
    %24 = arith.index_cast %c1_i32 : i32 to index
    %c0_6 = arith.constant 0 : index
    %c0_7 = arith.constant 0 : index
    %25 = vector.load %arg0[%24, %c0_6, %c0_7] : memref<8x8x256xf32, #tpu.memory_space<vmem>>, vector<1x8x256xf32>
    %26 = vector.shape_cast %25 : vector<1x8x256xf32> to vector<8x256xf32>
    %cst_8 = arith.constant dense<0.000000e+00> : vector<8x256xf32>
    %27 = tpu.matmul %23, %0, %cst_8 {dimension_numbers = #tpu.dot_dimension_numbers<[1], [0], [0], [1], [0, 0, 1, 1], [], []>} : vector<8x64xf32>, vector<64x256xf32>, vector<8x256xf32> -> vector<8x256xf32>
    %28 = arith.addf %26, %27 : vector<8x256xf32>
    %29 = vector.extract_strided_slice %28 {offsets = [0, 0], sizes = [8, 192], strides = [1, 1]} : vector<8x256xf32> to vector<8x192xf32>
    %30 = arith.negf %29 : vector<8x192xf32>
    %31 = math.exp %30 : vector<8x192xf32>
    %cst_9 = arith.constant 1.000000e+00 : f32
    %32 = vector.broadcast %cst_9 : f32 to vector<8x192xf32>
    %33 = arith.addf %32, %31 : vector<8x192xf32>
    %34 = arith.divf %32, %33 : vector<8x192xf32>
    %35 = vector.extract_strided_slice %28 {offsets = [0, 192], sizes = [8, 64], strides = [1, 1]} : vector<8x256xf32> to vector<8x64xf32>
    %36 = math.tanh %35 : vector<8x64xf32>
    %37 = vector.extract_strided_slice %34 {offsets = [0, 0], sizes = [8, 64], strides = [1, 1]} : vector<8x192xf32> to vector<8x64xf32>
    %38 = vector.extract_strided_slice %34 {offsets = [0, 64], sizes = [8, 64], strides = [1, 1]} : vector<8x192xf32> to vector<8x64xf32>
    %39 = vector.extract_strided_slice %34 {offsets = [0, 128], sizes = [8, 64], strides = [1, 1]} : vector<8x192xf32> to vector<8x64xf32>
    %40 = arith.mulf %38, %21 : vector<8x64xf32>
    %41 = arith.mulf %37, %36 : vector<8x64xf32>
    %42 = arith.addf %40, %41 : vector<8x64xf32>
    %43 = math.tanh %42 : vector<8x64xf32>
    %44 = arith.mulf %39, %43 : vector<8x64xf32>
    %c2_i32 = arith.constant 2 : i32
    %45 = arith.index_cast %c2_i32 : i32 to index
    %c0_10 = arith.constant 0 : index
    %c0_11 = arith.constant 0 : index
    %46 = vector.load %arg0[%45, %c0_10, %c0_11] : memref<8x8x256xf32, #tpu.memory_space<vmem>>, vector<1x8x256xf32>
    %47 = vector.shape_cast %46 : vector<1x8x256xf32> to vector<8x256xf32>
    %cst_12 = arith.constant dense<0.000000e+00> : vector<8x256xf32>
    %48 = tpu.matmul %44, %0, %cst_12 {dimension_numbers = #tpu.dot_dimension_numbers<[1], [0], [0], [1], [0, 0, 1, 1], [], []>} : vector<8x64xf32>, vector<64x256xf32>, vector<8x256xf32> -> vector<8x256xf32>
    %49 = arith.addf %47, %48 : vector<8x256xf32>
    %50 = vector.extract_strided_slice %49 {offsets = [0, 0], sizes = [8, 192], strides = [1, 1]} : vector<8x256xf32> to vector<8x192xf32>
    %51 = arith.negf %50 : vector<8x192xf32>
    %52 = math.exp %51 : vector<8x192xf32>
    %cst_13 = arith.constant 1.000000e+00 : f32
    %53 = vector.broadcast %cst_13 : f32 to vector<8x192xf32>
    %54 = arith.addf %53, %52 : vector<8x192xf32>
    %55 = arith.divf %53, %54 : vector<8x192xf32>
    %56 = vector.extract_strided_slice %49 {offsets = [0, 192], sizes = [8, 64], strides = [1, 1]} : vector<8x256xf32> to vector<8x64xf32>
    %57 = math.tanh %56 : vector<8x64xf32>
    %58 = vector.extract_strided_slice %55 {offsets = [0, 0], sizes = [8, 64], strides = [1, 1]} : vector<8x192xf32> to vector<8x64xf32>
    %59 = vector.extract_strided_slice %55 {offsets = [0, 64], sizes = [8, 64], strides = [1, 1]} : vector<8x192xf32> to vector<8x64xf32>
    %60 = vector.extract_strided_slice %55 {offsets = [0, 128], sizes = [8, 64], strides = [1, 1]} : vector<8x192xf32> to vector<8x64xf32>
    %61 = arith.mulf %59, %42 : vector<8x64xf32>
    %62 = arith.mulf %58, %57 : vector<8x64xf32>
    %63 = arith.addf %61, %62 : vector<8x64xf32>
    %64 = math.tanh %63 : vector<8x64xf32>
    %65 = arith.mulf %60, %64 : vector<8x64xf32>
    %c3_i32 = arith.constant 3 : i32
    %66 = arith.index_cast %c3_i32 : i32 to index
    %c0_14 = arith.constant 0 : index
    %c0_15 = arith.constant 0 : index
    %67 = vector.load %arg0[%66, %c0_14, %c0_15] : memref<8x8x256xf32, #tpu.memory_space<vmem>>, vector<1x8x256xf32>
    %68 = vector.shape_cast %67 : vector<1x8x256xf32> to vector<8x256xf32>
    %cst_16 = arith.constant dense<0.000000e+00> : vector<8x256xf32>
    %69 = tpu.matmul %65, %0, %cst_16 {dimension_numbers = #tpu.dot_dimension_numbers<[1], [0], [0], [1], [0, 0, 1, 1], [], []>} : vector<8x64xf32>, vector<64x256xf32>, vector<8x256xf32> -> vector<8x256xf32>
    %70 = arith.addf %68, %69 : vector<8x256xf32>
    %71 = vector.extract_strided_slice %70 {offsets = [0, 0], sizes = [8, 192], strides = [1, 1]} : vector<8x256xf32> to vector<8x192xf32>
    %72 = arith.negf %71 : vector<8x192xf32>
    %73 = math.exp %72 : vector<8x192xf32>
    %cst_17 = arith.constant 1.000000e+00 : f32
    %74 = vector.broadcast %cst_17 : f32 to vector<8x192xf32>
    %75 = arith.addf %74, %73 : vector<8x192xf32>
    %76 = arith.divf %74, %75 : vector<8x192xf32>
    %77 = vector.extract_strided_slice %70 {offsets = [0, 192], sizes = [8, 64], strides = [1, 1]} : vector<8x256xf32> to vector<8x64xf32>
    %78 = math.tanh %77 : vector<8x64xf32>
    %79 = vector.extract_strided_slice %76 {offsets = [0, 0], sizes = [8, 64], strides = [1, 1]} : vector<8x192xf32> to vector<8x64xf32>
    %80 = vector.extract_strided_slice %76 {offsets = [0, 64], sizes = [8, 64], strides = [1, 1]} : vector<8x192xf32> to vector<8x64xf32>
    %81 = vector.extract_strided_slice %76 {offsets = [0, 128], sizes = [8, 64], strides = [1, 1]} : vector<8x192xf32> to vector<8x64xf32>
    %82 = arith.mulf %80, %63 : vector<8x64xf32>
    %83 = arith.mulf %79, %78 : vector<8x64xf32>
    %84 = arith.addf %82, %83 : vector<8x64xf32>
    %85 = math.tanh %84 : vector<8x64xf32>
    %86 = arith.mulf %81, %85 : vector<8x64xf32>
    %c4_i32 = arith.constant 4 : i32
    %87 = arith.index_cast %c4_i32 : i32 to index
    %c0_18 = arith.constant 0 : index
    %c0_19 = arith.constant 0 : index
    %88 = vector.load %arg0[%87, %c0_18, %c0_19] : memref<8x8x256xf32, #tpu.memory_space<vmem>>, vector<1x8x256xf32>
    %89 = vector.shape_cast %88 : vector<1x8x256xf32> to vector<8x256xf32>
    %cst_20 = arith.constant dense<0.000000e+00> : vector<8x256xf32>
    %90 = tpu.matmul %86, %0, %cst_20 {dimension_numbers = #tpu.dot_dimension_numbers<[1], [0], [0], [1], [0, 0, 1, 1], [], []>} : vector<8x64xf32>, vector<64x256xf32>, vector<8x256xf32> -> vector<8x256xf32>
    %91 = arith.addf %89, %90 : vector<8x256xf32>
    %92 = vector.extract_strided_slice %91 {offsets = [0, 0], sizes = [8, 192], strides = [1, 1]} : vector<8x256xf32> to vector<8x192xf32>
    %93 = arith.negf %92 : vector<8x192xf32>
    %94 = math.exp %93 : vector<8x192xf32>
    %cst_21 = arith.constant 1.000000e+00 : f32
    %95 = vector.broadcast %cst_21 : f32 to vector<8x192xf32>
    %96 = arith.addf %95, %94 : vector<8x192xf32>
    %97 = arith.divf %95, %96 : vector<8x192xf32>
    %98 = vector.extract_strided_slice %91 {offsets = [0, 192], sizes = [8, 64], strides = [1, 1]} : vector<8x256xf32> to vector<8x64xf32>
    %99 = math.tanh %98 : vector<8x64xf32>
    %100 = vector.extract_strided_slice %97 {offsets = [0, 0], sizes = [8, 64], strides = [1, 1]} : vector<8x192xf32> to vector<8x64xf32>
    %101 = vector.extract_strided_slice %97 {offsets = [0, 64], sizes = [8, 64], strides = [1, 1]} : vector<8x192xf32> to vector<8x64xf32>
    %102 = vector.extract_strided_slice %97 {offsets = [0, 128], sizes = [8, 64], strides = [1, 1]} : vector<8x192xf32> to vector<8x64xf32>
    %103 = arith.mulf %101, %84 : vector<8x64xf32>
    %104 = arith.mulf %100, %99 : vector<8x64xf32>
    %105 = arith.addf %103, %104 : vector<8x64xf32>
    %106 = math.tanh %105 : vector<8x64xf32>
    %107 = arith.mulf %102, %106 : vector<8x64xf32>
    %c5_i32 = arith.constant 5 : i32
    %108 = arith.index_cast %c5_i32 : i32 to index
    %c0_22 = arith.constant 0 : index
    %c0_23 = arith.constant 0 : index
    %109 = vector.load %arg0[%108, %c0_22, %c0_23] : memref<8x8x256xf32, #tpu.memory_space<vmem>>, vector<1x8x256xf32>
    %110 = vector.shape_cast %109 : vector<1x8x256xf32> to vector<8x256xf32>
    %cst_24 = arith.constant dense<0.000000e+00> : vector<8x256xf32>
    %111 = tpu.matmul %107, %0, %cst_24 {dimension_numbers = #tpu.dot_dimension_numbers<[1], [0], [0], [1], [0, 0, 1, 1], [], []>} : vector<8x64xf32>, vector<64x256xf32>, vector<8x256xf32> -> vector<8x256xf32>
    %112 = arith.addf %110, %111 : vector<8x256xf32>
    %113 = vector.extract_strided_slice %112 {offsets = [0, 0], sizes = [8, 192], strides = [1, 1]} : vector<8x256xf32> to vector<8x192xf32>
    %114 = arith.negf %113 : vector<8x192xf32>
    %115 = math.exp %114 : vector<8x192xf32>
    %cst_25 = arith.constant 1.000000e+00 : f32
    %116 = vector.broadcast %cst_25 : f32 to vector<8x192xf32>
    %117 = arith.addf %116, %115 : vector<8x192xf32>
    %118 = arith.divf %116, %117 : vector<8x192xf32>
    %119 = vector.extract_strided_slice %112 {offsets = [0, 192], sizes = [8, 64], strides = [1, 1]} : vector<8x256xf32> to vector<8x64xf32>
    %120 = math.tanh %119 : vector<8x64xf32>
    %121 = vector.extract_strided_slice %118 {offsets = [0, 0], sizes = [8, 64], strides = [1, 1]} : vector<8x192xf32> to vector<8x64xf32>
    %122 = vector.extract_strided_slice %118 {offsets = [0, 64], sizes = [8, 64], strides = [1, 1]} : vector<8x192xf32> to vector<8x64xf32>
    %123 = vector.extract_strided_slice %118 {offsets = [0, 128], sizes = [8, 64], strides = [1, 1]} : vector<8x192xf32> to vector<8x64xf32>
    %124 = arith.mulf %122, %105 : vector<8x64xf32>
    %125 = arith.mulf %121, %120 : vector<8x64xf32>
    %126 = arith.addf %124, %125 : vector<8x64xf32>
    %127 = math.tanh %126 : vector<8x64xf32>
    %128 = arith.mulf %123, %127 : vector<8x64xf32>
    %c6_i32 = arith.constant 6 : i32
    %129 = arith.index_cast %c6_i32 : i32 to index
    %c0_26 = arith.constant 0 : index
    %c0_27 = arith.constant 0 : index
    %130 = vector.load %arg0[%129, %c0_26, %c0_27] : memref<8x8x256xf32, #tpu.memory_space<vmem>>, vector<1x8x256xf32>
    %131 = vector.shape_cast %130 : vector<1x8x256xf32> to vector<8x256xf32>
    %cst_28 = arith.constant dense<0.000000e+00> : vector<8x256xf32>
    %132 = tpu.matmul %128, %0, %cst_28 {dimension_numbers = #tpu.dot_dimension_numbers<[1], [0], [0], [1], [0, 0, 1, 1], [], []>} : vector<8x64xf32>, vector<64x256xf32>, vector<8x256xf32> -> vector<8x256xf32>
    %133 = arith.addf %131, %132 : vector<8x256xf32>
    %134 = vector.extract_strided_slice %133 {offsets = [0, 0], sizes = [8, 192], strides = [1, 1]} : vector<8x256xf32> to vector<8x192xf32>
    %135 = arith.negf %134 : vector<8x192xf32>
    %136 = math.exp %135 : vector<8x192xf32>
    %cst_29 = arith.constant 1.000000e+00 : f32
    %137 = vector.broadcast %cst_29 : f32 to vector<8x192xf32>
    %138 = arith.addf %137, %136 : vector<8x192xf32>
    %139 = arith.divf %137, %138 : vector<8x192xf32>
    %140 = vector.extract_strided_slice %133 {offsets = [0, 192], sizes = [8, 64], strides = [1, 1]} : vector<8x256xf32> to vector<8x64xf32>
    %141 = math.tanh %140 : vector<8x64xf32>
    %142 = vector.extract_strided_slice %139 {offsets = [0, 0], sizes = [8, 64], strides = [1, 1]} : vector<8x192xf32> to vector<8x64xf32>
    %143 = vector.extract_strided_slice %139 {offsets = [0, 64], sizes = [8, 64], strides = [1, 1]} : vector<8x192xf32> to vector<8x64xf32>
    %144 = vector.extract_strided_slice %139 {offsets = [0, 128], sizes = [8, 64], strides = [1, 1]} : vector<8x192xf32> to vector<8x64xf32>
    %145 = arith.mulf %143, %126 : vector<8x64xf32>
    %146 = arith.mulf %142, %141 : vector<8x64xf32>
    %147 = arith.addf %145, %146 : vector<8x64xf32>
    %148 = math.tanh %147 : vector<8x64xf32>
    %149 = arith.mulf %144, %148 : vector<8x64xf32>
    %c7_i32 = arith.constant 7 : i32
    %150 = arith.index_cast %c7_i32 : i32 to index
    %c0_30 = arith.constant 0 : index
    %c0_31 = arith.constant 0 : index
    %151 = vector.load %arg0[%150, %c0_30, %c0_31] : memref<8x8x256xf32, #tpu.memory_space<vmem>>, vector<1x8x256xf32>
    %152 = vector.shape_cast %151 : vector<1x8x256xf32> to vector<8x256xf32>
    %cst_32 = arith.constant dense<0.000000e+00> : vector<8x256xf32>
    %153 = tpu.matmul %149, %0, %cst_32 {dimension_numbers = #tpu.dot_dimension_numbers<[1], [0], [0], [1], [0, 0, 1, 1], [], []>} : vector<8x64xf32>, vector<64x256xf32>, vector<8x256xf32> -> vector<8x256xf32>
    %154 = arith.addf %152, %153 : vector<8x256xf32>
    %155 = vector.extract_strided_slice %154 {offsets = [0, 0], sizes = [8, 192], strides = [1, 1]} : vector<8x256xf32> to vector<8x192xf32>
    %156 = arith.negf %155 : vector<8x192xf32>
    %157 = math.exp %156 : vector<8x192xf32>
    %cst_33 = arith.constant 1.000000e+00 : f32
    %158 = vector.broadcast %cst_33 : f32 to vector<8x192xf32>
    %159 = arith.addf %158, %157 : vector<8x192xf32>
    %160 = arith.divf %158, %159 : vector<8x192xf32>
    %161 = vector.extract_strided_slice %154 {offsets = [0, 192], sizes = [8, 64], strides = [1, 1]} : vector<8x256xf32> to vector<8x64xf32>
    %162 = math.tanh %161 : vector<8x64xf32>
    %163 = vector.extract_strided_slice %160 {offsets = [0, 0], sizes = [8, 64], strides = [1, 1]} : vector<8x192xf32> to vector<8x64xf32>
    %164 = vector.extract_strided_slice %160 {offsets = [0, 64], sizes = [8, 64], strides = [1, 1]} : vector<8x192xf32> to vector<8x64xf32>
    %165 = vector.extract_strided_slice %160 {offsets = [0, 128], sizes = [8, 64], strides = [1, 1]} : vector<8x192xf32> to vector<8x64xf32>
    %166 = arith.mulf %164, %147 : vector<8x64xf32>
    %167 = arith.mulf %163, %162 : vector<8x64xf32>
    %168 = arith.addf %166, %167 : vector<8x64xf32>
    %169 = math.tanh %168 : vector<8x64xf32>
    %170 = arith.mulf %165, %169 : vector<8x64xf32>
    %c8_i32 = arith.constant 8 : i32
    %c0_34 = arith.constant 0 : index
    %c0_35 = arith.constant 0 : index
    %171 = vector.load %arg2[%c0_34, %c0_35] : memref<64x128xf32, #tpu.memory_space<vmem>>, vector<64x128xf32>
    %cst_36 = arith.constant dense<0.000000e+00> : vector<8x128xf32>
    %172 = tpu.matmul %170, %171, %cst_36 {dimension_numbers = #tpu.dot_dimension_numbers<[1], [0], [0], [1], [0, 0, 1, 1], [], []>} : vector<8x64xf32>, vector<64x128xf32>, vector<8x128xf32> -> vector<8x128xf32>
    %c0_37 = arith.constant 0 : index
    %c0_38 = arith.constant 0 : index
    %173 = vector.load %arg3[%c0_37, %c0_38] : memref<1x128xf32, #tpu.memory_space<vmem>>, vector<1x128xf32>
    %174 = vector.broadcast %173 : vector<1x128xf32> to vector<8x128xf32>
    %175 = arith.addf %172, %174 : vector<8x128xf32>
    %c0_39 = arith.constant 0 : index
    %c0_40 = arith.constant 0 : index
    %176 = vector.load %arg4[%c0_39, %c0_40] : memref<128x64xf32, #tpu.memory_space<vmem>>, vector<128x64xf32>
    %cst_41 = arith.constant dense<0.000000e+00> : vector<8x64xf32>
    %177 = tpu.matmul %175, %176, %cst_41 {dimension_numbers = #tpu.dot_dimension_numbers<[1], [0], [0], [1], [0, 0, 1, 1], [], []>} : vector<8x128xf32>, vector<128x64xf32>, vector<8x64xf32> -> vector<8x64xf32>
    %c0_42 = arith.constant 0 : index
    %c0_43 = arith.constant 0 : index
    %178 = vector.load %arg5[%c0_42, %c0_43] : memref<1x64xf32, #tpu.memory_space<vmem>>, vector<1x64xf32>
    %179 = vector.broadcast %178 : vector<1x64xf32> to vector<8x64xf32>
    %180 = arith.addf %177, %179 : vector<8x64xf32>
    %c0_44 = arith.constant 0 : index
    %c0_45 = arith.constant 0 : index
    %181 = vector.load %arg6[%c0_44, %c0_45] : memref<64x16xf32, #tpu.memory_space<vmem>>, vector<64x16xf32>
    %cst_46 = arith.constant dense<0.000000e+00> : vector<8x16xf32>
    %182 = tpu.matmul %180, %181, %cst_46 {dimension_numbers = #tpu.dot_dimension_numbers<[1], [0], [0], [1], [0, 0, 1, 1], [], []>} : vector<8x64xf32>, vector<64x16xf32>, vector<8x16xf32> -> vector<8x16xf32>
    %c0_47 = arith.constant 0 : index
    %c0_48 = arith.constant 0 : index
    %183 = vector.load %arg7[%c0_47, %c0_48] : memref<1x16xf32, #tpu.memory_space<vmem>>, vector<1x16xf32>
    %184 = vector.broadcast %183 : vector<1x16xf32> to vector<8x16xf32>
    %185 = arith.addf %182, %184 : vector<8x16xf32>
    %c0_49 = arith.constant 0 : index
    %c0_50 = arith.constant 0 : index
    %186 = vector.load %arg8[%c0_49, %c0_50] : memref<8x16xf32, #tpu.memory_space<vmem>>, vector<8x16xf32>
    tpu.vector_store %arg8[%c0_49, %c0_50], %185 {strides = array<i32>} : memref<8x16xf32, #tpu.memory_space<vmem>>, vector<8x16xf32>,
    return
  }
}

</mosaic_0001>

<bundles_post_ra>
// kernel: enhanced_rnn_forward.1
= control target key start
LH: loop header
LB: loop body
LE: loop exit
PB: predicated region body
PF: predicated region fallthrough
CT: control target
= control target key end

     0   :  { %v1475_v4 = vmov 0.0   ;;  %s1972_s0 = inlined_call_operand.vmem [shape: f32[8,8,256], index: 0, kind: input, shape index: {}]   ;;  %s1973_s1 = inlined_call_operand.vmem [shape: f32[64,256], index: 1, kind: input, shape index: {}]   ;;  %s1974_s2 = inlined_call_operand.vmem [shape: f32[64,128], index: 2, kind: input, shape index: {}]   ;;  %s1975_s3 = inlined_call_operand.vmem [shape: f32[1,128], index: 3, kind: input, shape index: {}]   ;;  %s1976_s4 = inlined_call_operand.vmem [shape: f32[128,64], index: 4, kind: input, shape index: {}]   ;;  %s1977_s5 = inlined_call_operand.vmem [shape: f32[1,64], index: 5, kind: input, shape index: {}]   ;;  %s1978_s6 = inlined_call_operand.vmem [shape: f32[64,16], index: 6, kind: input, shape index: {}]   ;;  %s1979_s7 = inlined_call_operand.vmem [shape: f32[1,16], index: 7, kind: input, shape index: {}]   ;;  %s1980_s8 = inlined_call_operand.hbm [shape: f32[8,16], index: 8, kind: output, shape index: {}]  }
   0x1   :  { %v1527_v0 = vld [vmem:[%s1973_s1 + $0x78] sm:$0xff]  ;;  %v1532_v1 = vld [vmem:[%s1973_s1 + $0x70] sm:$0xff]  ;;  %v1537_v2 = vld [vmem:[%s1973_s1 + $0x68] sm:$0xff]  ;;  %116 = vmatprep.mubr.f32.mxu0 %v1475_v4 }
   0x2   :  { %68 = vmatprep.subr.mxu0 %v1527_v0  ;;  %v1543_v3 = vld [vmem:[%s1973_s1 + $0x60] sm:$0xff]  ;;  %v1550_v5 = vld [vmem:[%s1973_s1 + $0x58] sm:$0xff]  ;;  %177 = vmatprep.subr.mxu1 %v1527_v0  ;;  %v1557_v6 = vld [vmem:[%s1973_s1 + $0x50] sm:$0xff] }
   0x3   :  { %69 = vmatpush1.msra.mxu0 %v1532_v1  ;;  %178 = vmatpush1.msra.mxu1 %v1532_v1  ;;  %v1564_v7 = vld [vmem:[%s1973_s1 + $0x48] sm:$0xff]  ;;  %v1571_v8 = vld [vmem:[%s1973_s1 + $0x40] sm:$0xff] }
   0x4   :  { %70 = vmatprep.subr.mxu0 %v1537_v2  ;;  %179 = vmatprep.subr.mxu1 %v1537_v2 }
   0x5   :  { %71 = vmatpush1.msra.mxu0 %v1543_v3  ;;  %180 = vmatpush1.msra.mxu1 %v1543_v3 }
   0x6   :  { %72 = vmatprep.subr.mxu0 %v1550_v5 }
   0x7   :  { %13 = vsyncpa [#allocation3], 0  ;;  %73 = vmatpush1.msra.mxu0 %v1557_v6  ;;  %v1578_v9 = vld [vmem:[%s1973_s1 + $0x38] sm:$0xff]  ;;  %181 = vmatprep.subr.mxu1 %v1550_v5  ;;  %v1585_v10 = vld [vmem:[%s1973_s1 + $0x30] sm:$0xff]  ;;  %s1476_s16 = smov 64   ;;  %vm48_vm0 = vcmask 523264  }
   0x8   :  { %74 = vmatprep.subr.mxu0 %v1564_v7  ;;  %182 = vmatpush1.msra.mxu1 %v1557_v6  ;;  %v1592_v11 = vld [vmem:[%s1973_s1 + $0x28] sm:$0xff]  ;;  %v1599_v12 = vld [vmem:[%s1973_s1 + $0x20] sm:$0xff]  ;;  %v1606_v13 = vld [vmem:[%s1973_s1 + $0x18] sm:$0xff]  ;;  %vm1477_vm1 = vmmov 0   ;;  %s1478_s20 = smov [#allocation2]   ;;  %vm1187_vm2 = vcmask 130048  }
   0x9   :  { %75 = vmatpush1.msra.mxu0 %v1571_v8  ;;  %183 = vmatprep.subr.mxu1 %v1564_v7  ;;  %v1613_v14 = vld [vmem:[%s1973_s1 + $0x10] sm:$0xff]  ;;  %v1620_v15 = vld [vmem:[%s1973_s1 + $0x8] sm:$0xff]  ;;  %v1627_v16 = vld [vmem:[%s1973_s1] sm:$0xff]  ;;  %s1195_s21 = sshll.u32 %s1478_s20, 4  ;;  %s1196_s21 = int_to_ptr.vmem [resolvable:$true] %s1195_s21 }
   0xa   :  { %76 = vmatprep.subr.mxu0 %v1578_v9  ;;  %184 = vmatpush1.msra.mxu1 %v1571_v8  ;;  %v47_v18 = vld [vmem:[%s1972_s0 + $0x8] sm:$0xff]  ;;  %v46_v22 = vld [vmem:[%s1972_s0] sm:$0xff]  ;;  %v1206_v41 = vld [vmem:[%s1972_s0 + $0x18] sm:$0xff]  ;;  %p1458_p1 = scmp.lt.s32.totalorder %s1196_s21, %s1196_s21 }
   0xb   :  { %77 = vmatpush1.msra.mxu0 %v1585_v10  ;;  %185 = vmatprep.subr.mxu1 %v1578_v9  ;;  %v1205_v45 = vld [vmem:[%s1972_s0 + $0x10] sm:$0xff] }
   0xc   :  { %78 = vmatprep.subr.mxu0 %v1592_v11  ;;  %186 = vmatpush1.msra.mxu1 %v1585_v10 }
   0xd   :  { %79 = vmatpush1.msra.mxu0 %v1599_v12  ;;  %187 = vmatprep.subr.mxu1 %v1592_v11 }
   0xe   :  { %80 = vmatprep.subr.mxu0 %v1606_v13  ;;  %188 = vmatpush1.msra.mxu1 %v1599_v12 }
   0xf   :  { %81 = vmatpush1.msra.mxu0 %v1613_v14  ;;  %189 = vmatprep.subr.mxu1 %v1606_v13 }
  0x10   :  { %82 = vmatprep.subr.mxu0 %v1620_v15  ;;  %190 = vmatpush1.msra.mxu1 %v1613_v14 }
  0x11   :  { %83 = vmatpush1.msra.mxu0 %v1627_v16  ;;  %191 = vmatprep.subr.mxu1 %v1620_v15 }
  0x12   :  { %117 = vmatmul.mubr.f32.vlgmr.msra.gmra.mxu0 %v1475_v4  ;;  %192 = vmatpush1.msra.mxu1 %v1627_v16 }
  0x13   :  { %225 = vmatprep.mubr.f32.mxu1 %v1475_v4  ;;  %286 = vmatprep.subr.mxu0 %v1527_v0 }
  0x14   :  { %287 = vmatpush1.msra.mxu0 %v1532_v1  ;;  %334 = vmatprep.mubr.f32.mxu0 %v1475_v4 }
  0x15   :  { %288 = vmatprep.subr.mxu0 %v1537_v2  ;;  %395 = vmatprep.subr.mxu1 %v1527_v0 }
  0x16   :  { %289 = vmatpush1.msra.mxu0 %v1543_v3 }
  0x17   :  { %290 = vmatprep.subr.mxu0 %v1550_v5 }
  0x18   :  { %291 = vmatpush1.msra.mxu0 %v1557_v6 }
  0x19   :  { %292 = vmatprep.subr.mxu0 %v1564_v7 }
  0x1a   :  { %293 = vmatpush1.msra.mxu0 %v1571_v8 }
  0x1b   :  { %294 = vmatprep.subr.mxu0 %v1578_v9 }
  0x1c   :  { %295 = vmatpush1.msra.mxu0 %v1585_v10 }
  0x1d   :  { %296 = vmatprep.subr.mxu0 %v1592_v11 }
  0x1e   :  { %297 = vmatpush1.msra.mxu0 %v1599_v12 }
  0x1f   :  { %298 = vmatprep.subr.mxu0 %v1606_v13 }
  0x20   :  { %299 = vmatpush1.msra.mxu0 %v1613_v14 }
  0x21   :  { %300 = vmatprep.subr.mxu0 %v1620_v15 }
  0x22   :  { %301 = vmatpush1.msra.mxu0 %v1627_v16 }
  0x23   :  { %504 = vmatprep.subr.mxu0 %v1527_v0 }
  0xd2   :  { %v118_v17 = vpop.f32.mrf.mxu0 }
  0xd3   :  { %v123_v23 = vadd.f32 %v118_v17, %v46_v22  ;;  %v1211_v17 = vld [vmem:[%s1972_s0 + $0x28] sm:$0xff] }
  0xd4   :  { %v120_v19 = vpop.f32.mrf.mxu0 }
  0xd5   :  { %v124_v20 = vadd.f32 %v120_v19, %v47_v18  ;;  %v1203_v24 = vmul.f32 -1.442695, %v123_v23 }
  0xd7   :  { %1357 = vtanh.f32 %v124_v20  ;;  %v1204_v34 = vmul.f32 -1.442695, %v124_v20 }
  0xd8   :  { %1359 = vpow2.f32 %v1203_v24 }
  0xe4   :  { %v1358_v21 = vpop.eup %1357 }
  0xe5   :  { %140 = vrot.lane.b32.xlu0 %v1358_v21, %s1476_s16  ;;  %v1360_v25 = vpop.eup %1359  ;;  %v1210_v21 = vld [vmem:[%s1972_s0 + $0x20] sm:$0xff] }
  0xe6   :  { %v131_v26 = vadd.f32 1.0, %v1360_v25 }
  0xe8   :  { %1361 = vrcp.f32 %v131_v26 }
  0xf5   :  { %v1362_v27 = vpop.eup %1361 }
  0xf6   :  { %v138_v30 = vmul.f32 0.0, %v1362_v27 }
 0x157   :  { %v141_v28 = vpop.permute.xlu0 %140 }
 0x158   :  { %v143_v29 = vmul.f32 %v1362_v27, %v141_v28 }
 0x15a   :  { %145 = vrot.lane.b32.xlu0 %v143_v29, %s1476_s16 }
 0x1cc   :  { %v146_v31 = vpop.permute.xlu0 %145 }
 0x1cd   :  { %v148_v32 = vadd.f32 %v146_v31, %v138_v30 }
 0x1cf   :  { %1363 = vtanh.f32 %v148_v32 }
 0x1d0   :  { %1365 = vpow2.f32 %v1204_v34 }
 0x1dc   :  { %v1364_v33 = vpop.eup %1363 }
 0x1dd   :  { %151 = vrot.lane.b32.xlu1 %v1364_v33, %s1476_s16  ;;  %v1366_v35 = vpop.eup %1365 }
 0x1de   :  { %v132_v36 = vadd.f32 1.0, %v1366_v35 }
 0x1e0   :  { %1367 = vrcp.f32 %v132_v36 }
 0x1ed   :  { %v1368_v37 = vpop.eup %1367 }
 0x24f   :  { %v152_v38 = vpop.permute.xlu1 %151 }
 0x250   :  { %v154_v39 = vmul.f32 %v1368_v37, %v152_v38 }
 0x252   :  { %1207 = vmatmul.mubr.msk.f32.vlgmr.msra.gmra.mxu1 %vm48_vm0, %v154_v39 }
 0x253   :  { %396 = vmatpush1.msra.mxu1 %v1532_v1  ;;  %443 = vmatprep.mubr.f32.mxu1 %v1475_v4 }
 0x254   :  { %397 = vmatprep.subr.mxu1 %v1537_v2 }
 0x255   :  { %398 = vmatpush1.msra.mxu1 %v1543_v3 }
 0x256   :  { %399 = vmatprep.subr.mxu1 %v1550_v5 }
 0x257   :  { %400 = vmatpush1.msra.mxu1 %v1557_v6 }
 0x258   :  { %401 = vmatprep.subr.mxu1 %v1564_v7 }
 0x259   :  { %402 = vmatpush1.msra.mxu1 %v1571_v8 }
 0x25a   :  { %403 = vmatprep.subr.mxu1 %v1578_v9 }
 0x25b   :  { %404 = vmatpush1.msra.mxu1 %v1585_v10 }
 0x25c   :  { %405 = vmatprep.subr.mxu1 %v1592_v11 }
 0x25d   :  { %406 = vmatpush1.msra.mxu1 %v1599_v12 }
 0x25e   :  { %407 = vmatprep.subr.mxu1 %v1606_v13 }
 0x25f   :  { %408 = vmatpush1.msra.mxu1 %v1613_v14 }
 0x260   :  { %409 = vmatprep.subr.mxu1 %v1620_v15 }
 0x261   :  { %410 = vmatpush1.msra.mxu1 %v1627_v16 }
 0x262   :  { %613 = vmatprep.subr.mxu1 %v1527_v0 }
 0x312   :  { %v227_v40 = vpop.f32.mrf.mxu1 }
 0x313   :  { %v232_v46 = vadd.f32 %v1205_v45, %v227_v40  ;;  %v1216_v40 = vld [vmem:[%s1972_s0 + $0x38] sm:$0xff] }
 0x314   :  { %v229_v42 = vpop.f32.mrf.mxu1 }
 0x315   :  { %v233_v43 = vadd.f32 %v1206_v41, %v229_v42  ;;  %v1208_v47 = vmul.f32 -1.442695, %v232_v46 }
 0x317   :  { %1369 = vtanh.f32 %v233_v43  ;;  %v1209_v57 = vmul.f32 -1.442695, %v233_v43 }
 0x318   :  { %1371 = vpow2.f32 %v1208_v47 }
 0x324   :  { %v1370_v44 = vpop.eup %1369 }
 0x325   :  { %249 = vrot.lane.b32.xlu1 %v1370_v44, %s1476_s16  ;;  %v1372_v48 = vpop.eup %1371  ;;  %v1215_v44 = vld [vmem:[%s1972_s0 + $0x30] sm:$0xff] }
 0x326   :  { %v240_v49 = vadd.f32 1.0, %v1372_v48 }
 0x328   :  { %1373 = vrcp.f32 %v240_v49 }
 0x335   :  { %v1374_v50 = vpop.eup %1373 }
 0x336   :  { %v247_v53 = vmul.f32 %v1374_v50, %v148_v32 }
 0x397   :  { %v250_v51 = vpop.permute.xlu1 %249 }
 0x398   :  { %v252_v52 = vmul.f32 %v1374_v50, %v250_v51 }
 0x39a   :  { %254 = vrot.lane.b32.xlu0 %v252_v52, %s1476_s16 }
 0x40c   :  { %v255_v54 = vpop.permute.xlu0 %254 }
 0x40d   :  { %v257_v55 = vadd.f32 %v255_v54, %v247_v53 }
 0x40f   :  { %1375 = vtanh.f32 %v257_v55 }
 0x410   :  { %1377 = vpow2.f32 %v1209_v57 }
 0x41c   :  { %v1376_v56 = vpop.eup %1375 }
 0x41d   :  { %260 = vrot.lane.b32.xlu1 %v1376_v56, %s1476_s16  ;;  %v1378_v58 = vpop.eup %1377 }
 0x41e   :  { %v241_v59 = vadd.f32 1.0, %v1378_v58 }
 0x420   :  { %1379 = vrcp.f32 %v241_v59 }
 0x42d   :  { %v1380_v60 = vpop.eup %1379 }
 0x48f   :  { %v261_v61 = vpop.permute.xlu1 %260 }
 0x490   :  { %v263_v62 = vmul.f32 %v1380_v60, %v261_v61 }
 0x492   :  { %1212 = vmatmul.mubr.msk.f32.vlgmr.msra.gmra.mxu0 %vm48_vm0, %v263_v62  ;;  %v1221_v62 = vld [vmem:[%s1972_s0 + $0x48] sm:$0xff] }
 0x493   :  { %505 = vmatpush1.msra.mxu0 %v1532_v1  ;;  %552 = vmatprep.mubr.f32.mxu0 %v1475_v4 }
 0x494   :  { %506 = vmatprep.subr.mxu0 %v1537_v2 }
 0x495   :  { %507 = vmatpush1.msra.mxu0 %v1543_v3 }
 0x496   :  { %508 = vmatprep.subr.mxu0 %v1550_v5 }
 0x497   :  { %509 = vmatpush1.msra.mxu0 %v1557_v6 }
 0x498   :  { %510 = vmatprep.subr.mxu0 %v1564_v7 }
 0x499   :  { %511 = vmatpush1.msra.mxu0 %v1571_v8 }
 0x49a   :  { %512 = vmatprep.subr.mxu0 %v1578_v9 }
 0x49b   :  { %513 = vmatpush1.msra.mxu0 %v1585_v10 }
 0x49c   :  { %514 = vmatprep.subr.mxu0 %v1592_v11 }
 0x49d   :  { %515 = vmatpush1.msra.mxu0 %v1599_v12 }
 0x49e   :  { %516 = vmatprep.subr.mxu0 %v1606_v13 }
 0x49f   :  { %517 = vmatpush1.msra.mxu0 %v1613_v14 }
 0x4a0   :  { %518 = vmatprep.subr.mxu0 %v1620_v15 }
 0x4a1   :  { %519 = vmatpush1.msra.mxu0 %v1627_v16 }
 0x4a2   :  { %722 = vmatprep.subr.mxu0 %v1527_v0 }
 0x552   :  { %v336_v63 = vpop.f32.mrf.mxu0 }
 0x553   :  { %v341_v22 = vadd.f32 %v1210_v21, %v336_v63 }
 0x554   :  { %v338_v18 = vpop.f32.mrf.mxu0 }
 0x555   :  { %v342_v19 = vadd.f32 %v1211_v17, %v338_v18  ;;  %v1213_v23 = vmul.f32 -1.442695, %v341_v22 }
 0x557   :  { %1381 = vtanh.f32 %v342_v19  ;;  %v1214_v33 = vmul.f32 -1.442695, %v342_v19  ;;  %v1220_v19 = vld [vmem:[%s1972_s0 + $0x40] sm:$0xff] }
 0x558   :  { %1383 = vpow2.f32 %v1213_v23 }
 0x564   :  { %v1382_v20 = vpop.eup %1381 }
 0x565   :  { %358 = vrot.lane.b32.xlu0 %v1382_v20, %s1476_s16  ;;  %v1384_v24 = vpop.eup %1383 }
 0x566   :  { %v349_v25 = vadd.f32 1.0, %v1384_v24 }
 0x568   :  { %1385 = vrcp.f32 %v349_v25 }
 0x575   :  { %v1386_v26 = vpop.eup %1385 }
 0x576   :  { %v356_v29 = vmul.f32 %v1386_v26, %v257_v55 }
 0x5d7   :  { %v359_v27 = vpop.permute.xlu0 %358 }
 0x5d8   :  { %v361_v28 = vmul.f32 %v1386_v26, %v359_v27 }
 0x5da   :  { %363 = vrot.lane.b32.xlu1 %v361_v28, %s1476_s16 }
 0x64c   :  { %v364_v30 = vpop.permute.xlu1 %363 }
 0x64d   :  { %v366_v31 = vadd.f32 %v364_v30, %v356_v29 }
 0x64f   :  { %1387 = vtanh.f32 %v366_v31 }
 0x650   :  { %1389 = vpow2.f32 %v1214_v33 }
 0x65c   :  { %v1388_v32 = vpop.eup %1387 }
 0x65d   :  { %369 = vrot.lane.b32.xlu0 %v1388_v32, %s1476_s16  ;;  %v1390_v34 = vpop.eup %1389 }
 0x65e   :  { %v350_v35 = vadd.f32 1.0, %v1390_v34 }
 0x660   :  { %1391 = vrcp.f32 %v350_v35 }
 0x66d   :  { %v1392_v36 = vpop.eup %1391 }
 0x6cf   :  { %v370_v37 = vpop.permute.xlu0 %369 }
 0x6d0   :  { %v372_v38 = vmul.f32 %v1392_v36, %v370_v37 }
 0x6d2   :  { %1217 = vmatmul.mubr.msk.f32.vlgmr.msra.gmra.mxu1 %vm48_vm0, %v372_v38 }
 0x6d3   :  { %614 = vmatpush1.msra.mxu1 %v1532_v1  ;;  %661 = vmatprep.mubr.f32.mxu1 %v1475_v4 }
 0x6d4   :  { %615 = vmatprep.subr.mxu1 %v1537_v2 }
 0x6d5   :  { %616 = vmatpush1.msra.mxu1 %v1543_v3 }
 0x6d6   :  { %617 = vmatprep.subr.mxu1 %v1550_v5 }
 0x6d7   :  { %618 = vmatpush1.msra.mxu1 %v1557_v6 }
 0x6d8   :  { %619 = vmatprep.subr.mxu1 %v1564_v7 }
 0x6d9   :  { %620 = vmatpush1.msra.mxu1 %v1571_v8 }
 0x6da   :  { %621 = vmatprep.subr.mxu1 %v1578_v9 }
 0x6db   :  { %622 = vmatpush1.msra.mxu1 %v1585_v10 }
 0x6dc   :  { %623 = vmatprep.subr.mxu1 %v1592_v11 }
 0x6dd   :  { %624 = vmatpush1.msra.mxu1 %v1599_v12 }
 0x6de   :  { %625 = vmatprep.subr.mxu1 %v1606_v13 }
 0x6df   :  { %626 = vmatpush1.msra.mxu1 %v1613_v14 }
 0x6e0   :  { %627 = vmatprep.subr.mxu1 %v1620_v15 }
 0x6e1   :  { %628 = vmatpush1.msra.mxu1 %v1627_v16 }
 0x6e2   :  { %831 = vmatprep.subr.mxu1 %v1527_v0 }
 0x792   :  { %v445_v39 = vpop.f32.mrf.mxu1 }
 0x793   :  { %v450_v45 = vadd.f32 %v1215_v44, %v445_v39 }
 0x794   :  { %v447_v41 = vpop.f32.mrf.mxu1 }
 0x795   :  { %v451_v42 = vadd.f32 %v1216_v40, %v447_v41  ;;  %v1218_v46 = vmul.f32 -1.442695, %v450_v45 }
 0x797   :  { %1393 = vtanh.f32 %v451_v42  ;;  %v1219_v55 = vmul.f32 -1.442695, %v451_v42 }
 0x798   :  { %1395 = vpow2.f32 %v1218_v46  ;;  %v1231_v46 = vld [vmem:[%s1972_s0 + $0x68] sm:$0xff] }
 0x7a4   :  { %v1394_v43 = vpop.eup %1393 }
 0x7a5   :  { %467 = vrot.lane.b32.xlu1 %v1394_v43, %s1476_s16  ;;  %v1396_v47 = vpop.eup %1395 }
 0x7a6   :  { %v458_v0 = vadd.f32 1.0, %v1396_v47 }
 0x7a8   :  { %1397 = vrcp.f32 %v458_v0 }
 0x7b5   :  { %v1398_v48 = vpop.eup %1397 }
 0x7b6   :  { %v465_v51 = vmul.f32 %v1398_v48, %v366_v31 }
 0x817   :  { %v468_v49 = vpop.permute.xlu1 %467 }
 0x818   :  { %v470_v50 = vmul.f32 %v1398_v48, %v468_v49  ;;  %v1230_v49 = vld [vmem:[%s1972_s0 + $0x60] sm:$0xff] }
 0x81a   :  { %472 = vrot.lane.b32.xlu0 %v470_v50, %s1476_s16 }
 0x88c   :  { %v473_v52 = vpop.permute.xlu0 %472 }
 0x88d   :  { %v475_v53 = vadd.f32 %v473_v52, %v465_v51 }
 0x88f   :  { %1399 = vtanh.f32 %v475_v53 }
 0x890   :  { %1401 = vpow2.f32 %v1219_v55 }
 0x89c   :  { %v1400_v54 = vpop.eup %1399 }
 0x89d   :  { %478 = vrot.lane.b32.xlu1 %v1400_v54, %s1476_s16  ;;  %v1402_v56 = vpop.eup %1401 }
 0x89e   :  { %v459_v57 = vadd.f32 1.0, %v1402_v56 }
 0x8a0   :  { %1403 = vrcp.f32 %v459_v57 }
 0x8ad   :  { %v1404_v58 = vpop.eup %1403 }
 0x90f   :  { %v479_v59 = vpop.permute.xlu1 %478 }
 0x910   :  { %v481_v60 = vmul.f32 %v1404_v58, %v479_v59 }
 0x912   :  { %1222 = vmatmul.mubr.msk.f32.vlgmr.msra.gmra.mxu0 %vm48_vm0, %v481_v60 }
 0x913   :  { %723 = vmatpush1.msra.mxu0 %v1532_v1  ;;  %770 = vmatprep.mubr.f32.mxu0 %v1475_v4 }
 0x914   :  { %724 = vmatprep.subr.mxu0 %v1537_v2 }
 0x915   :  { %725 = vmatpush1.msra.mxu0 %v1543_v3 }
 0x916   :  { %726 = vmatprep.subr.mxu0 %v1550_v5 }
 0x917   :  { %727 = vmatpush1.msra.mxu0 %v1557_v6 }
 0x918   :  { %728 = vmatprep.subr.mxu0 %v1564_v7 }
 0x919   :  { %729 = vmatpush1.msra.mxu0 %v1571_v8 }
 0x91a   :  { %730 = vmatprep.subr.mxu0 %v1578_v9 }
 0x91b   :  { %731 = vmatpush1.msra.mxu0 %v1585_v10 }
 0x91c   :  { %732 = vmatprep.subr.mxu0 %v1592_v11 }
 0x91d   :  { %733 = vmatpush1.msra.mxu0 %v1599_v12 }
 0x91e   :  { %734 = vmatprep.subr.mxu0 %v1606_v13 }
 0x91f   :  { %735 = vmatpush1.msra.mxu0 %v1613_v14 }
 0x920   :  { %736 = vmatprep.subr.mxu0 %v1620_v15 }
 0x921   :  { %737 = vmatpush1.msra.mxu0 %v1627_v16 }
 0x922   :  { %1280 = vmatprep.subr.mxu0 %v1475_v4 }
 0x9d2   :  { %v554_v61 = vpop.f32.mrf.mxu0 }
 0x9d3   :  { %v559_v20 = vadd.f32 %v1220_v19, %v554_v61 }
 0x9d4   :  { %v556_v63 = vpop.f32.mrf.mxu0 }
 0x9d5   :  { %v560_v17 = vadd.f32 %v1221_v62, %v556_v63  ;;  %v1223_v21 = vmul.f32 -1.442695, %v559_v20 }
 0x9d7   :  { %1405 = vtanh.f32 %v560_v17  ;;  %v1224_v31 = vmul.f32 -1.442695, %v560_v17 }
 0x9d8   :  { %1407 = vpow2.f32 %v1223_v21  ;;  %v1236_v21 = vld [vmem:[%s1972_s0 + $0x78] sm:$0xff] }
 0x9e4   :  { %v1406_v18 = vpop.eup %1405 }
 0x9e5   :  { %576 = vrot.lane.b32.xlu0 %v1406_v18, %s1476_s16  ;;  %v1408_v22 = vpop.eup %1407 }
 0x9e6   :  { %v567_v23 = vadd.f32 1.0, %v1408_v22 }
 0x9e8   :  { %1409 = vrcp.f32 %v567_v23 }
 0x9f5   :  { %v1410_v24 = vpop.eup %1409 }
 0x9f6   :  { %v574_v27 = vmul.f32 %v1410_v24, %v475_v53 }
 0xa57   :  { %v577_v25 = vpop.permute.xlu0 %576 }
 0xa58   :  { %v579_v26 = vmul.f32 %v1410_v24, %v577_v25  ;;  %v1235_v25 = vld [vmem:[%s1972_s0 + $0x70] sm:$0xff] }
 0xa5a   :  { %581 = vrot.lane.b32.xlu1 %v579_v26, %s1476_s16 }
 0xacc   :  { %v582_v28 = vpop.permute.xlu1 %581 }
 0xacd   :  { %v584_v29 = vadd.f32 %v582_v28, %v574_v27 }
 0xacf   :  { %1411 = vtanh.f32 %v584_v29 }
 0xad0   :  { %1413 = vpow2.f32 %v1224_v31 }
 0xadc   :  { %v1412_v30 = vpop.eup %1411 }
 0xadd   :  { %587 = vrot.lane.b32.xlu0 %v1412_v30, %s1476_s16  ;;  %v1414_v32 = vpop.eup %1413 }
 0xade   :  { %v568_v33 = vadd.f32 1.0, %v1414_v32 }
 0xae0   :  { %1415 = vrcp.f32 %v568_v33  ;;  %v925_v33 = vld [vmem:[%s1974_s2 + $0x38] sm:$0xff] }
 0xaed   :  { %v1416_v34 = vpop.eup %1415 }
 0xb4f   :  { %v588_v35 = vpop.permute.xlu0 %587 }
 0xb50   :  { %v590_v36 = vmul.f32 %v1416_v34, %v588_v35  ;;  %v924_v34 = vld [vmem:[%s1974_s2 + $0x30] sm:$0xff]  ;;  %v923_v35 = vld [vmem:[%s1974_s2 + $0x28] sm:$0xff] }
 0xb52   :  { %1227 = vmatmul.mubr.msk.f32.vlgmr.msra.gmra.mxu1 %vm48_vm0, %v590_v36  ;;  %v922_v36 = vld [vmem:[%s1974_s2 + $0x20] sm:$0xff] }
 0xb53   :  { %832 = vmatpush1.msra.mxu1 %v1532_v1  ;;  %879 = vmatprep.mubr.f32.mxu1 %v1475_v4 }
 0xb54   :  { %833 = vmatprep.subr.mxu1 %v1537_v2  ;;  %v1226_v2 = vld [vmem:[%s1972_s0 + $0x58] sm:$0xff] }
 0xb55   :  { %834 = vmatpush1.msra.mxu1 %v1543_v3 }
 0xb56   :  { %835 = vmatprep.subr.mxu1 %v1550_v5 }
 0xb57   :  { %836 = vmatpush1.msra.mxu1 %v1557_v6 }
 0xb58   :  { %837 = vmatprep.subr.mxu1 %v1564_v7  ;;  %v1225_v7 = vld [vmem:[%s1972_s0 + $0x50] sm:$0xff] }
 0xb59   :  { %838 = vmatpush1.msra.mxu1 %v1571_v8 }
 0xb5a   :  { %839 = vmatprep.subr.mxu1 %v1578_v9 }
 0xb5b   :  { %840 = vmatpush1.msra.mxu1 %v1585_v10 }
 0xb5c   :  { %841 = vmatprep.subr.mxu1 %v1592_v11 }
 0xb5d   :  { %842 = vmatpush1.msra.mxu1 %v1599_v12 }
 0xb5e   :  { %843 = vmatprep.subr.mxu1 %v1606_v13 }
 0xb5f   :  { %844 = vmatpush1.msra.mxu1 %v1613_v14 }
 0xb60   :  { %845 = vmatprep.subr.mxu1 %v1620_v15 }
 0xb61   :  { %846 = vmatpush1.msra.mxu1 %v1627_v16 }
 0xb62   :  { %1299 = vmatprep.subr.mxu1 %v1475_v4 }
 0xc12   :  { %v663_v1 = vpop.f32.mrf.mxu1 }
 0xc13   :  { %v668_v8 = vadd.f32 %v1225_v7, %v663_v1  ;;  %v921_v1 = vld [vmem:[%s1974_s2 + $0x18] sm:$0xff] }
 0xc14   :  { %v665_v3 = vpop.f32.mrf.mxu1 }
 0xc15   :  { %v669_v5 = vadd.f32 %v1226_v2, %v665_v3  ;;  %v1228_v9 = vmul.f32 -1.442695, %v668_v8  ;;  %v920_v2 = vld [vmem:[%s1974_s2 + $0x10] sm:$0xff]  ;;  %v919_v3 = vld [vmem:[%s1974_s2 + $0x8] sm:$0xff]  ;;  %v918_v8 = vld [vmem:[%s1974_s2] sm:$0xff] }
 0xc17   :  { %1417 = vtanh.f32 %v669_v5  ;;  %v1229_v39 = vmul.f32 -1.442695, %v669_v5 }
 0xc18   :  { %1419 = vpow2.f32 %v1228_v9  ;;  %v1021_v9 = vld [vmem:[%s1976_s4 + $0x78] sm:$0xff] }
 0xc24   :  { %v1418_v6 = vpop.eup %1417 }
 0xc25   :  { %685 = vrot.lane.b32.xlu1 %v1418_v6, %s1476_s16  ;;  %v1420_v10 = vpop.eup %1419 }
 0xc26   :  { %v676_v11 = vadd.f32 1.0, %v1420_v10  ;;  %v1020_v10 = vld [vmem:[%s1976_s4 + $0x70] sm:$0xff] }
 0xc28   :  { %1421 = vrcp.f32 %v676_v11  ;;  %v1019_v11 = vld [vmem:[%s1976_s4 + $0x68] sm:$0xff] }
 0xc35   :  { %v1422_v12 = vpop.eup %1421 }
 0xc36   :  { %v683_v15 = vmul.f32 %v1422_v12, %v584_v29 }
 0xc97   :  { %v686_v13 = vpop.permute.xlu1 %685 }
 0xc98   :  { %v688_v14 = vmul.f32 %v1422_v12, %v686_v13  ;;  %v1018_v12 = vld [vmem:[%s1976_s4 + $0x60] sm:$0xff]  ;;  %v1017_v13 = vld [vmem:[%s1976_s4 + $0x58] sm:$0xff] }
 0xc9a   :  { %690 = vrot.lane.b32.xlu0 %v688_v14, %s1476_s16  ;;  %v1016_v14 = vld [vmem:[%s1976_s4 + $0x50] sm:$0xff] }
 0xd0c   :  { %v691_v16 = vpop.permute.xlu0 %690 }
 0xd0d   :  { %v693_v37 = vadd.f32 %v691_v16, %v683_v15  ;;  %v1015_v16 = vld [vmem:[%s1976_s4 + $0x48] sm:$0xff] }
 0xd0f   :  { %1423 = vtanh.f32 %v693_v37 }
 0xd10   :  { %1425 = vpow2.f32 %v1229_v39  ;;  %v1012_v39 = vld [vmem:[%s1976_s4 + $0x30] sm:$0xff] }
 0xd1c   :  { %v1424_v38 = vpop.eup %1423 }
 0xd1d   :  { %696 = vrot.lane.b32.xlu1 %v1424_v38, %s1476_s16  ;;  %v1426_v40 = vpop.eup %1425  ;;  %v1013_v38 = vld [vmem:[%s1976_s4 + $0x38] sm:$0xff] }
 0xd1e   :  { %v677_v41 = vadd.f32 1.0, %v1426_v40  ;;  %v1011_v40 = vld [vmem:[%s1976_s4 + $0x28] sm:$0xff] }
 0xd20   :  { %1427 = vrcp.f32 %v677_v41  ;;  %v1010_v41 = vld [vmem:[%s1976_s4 + $0x20] sm:$0xff] }
 0xd2d   :  { %v1428_v42 = vpop.eup %1427 }
 0xd8f   :  { %v697_v43 = vpop.permute.xlu1 %696 }
 0xd90   :  { %v699_v44 = vmul.f32 %v1428_v42, %v697_v43  ;;  %v1009_v42 = vld [vmem:[%s1976_s4 + $0x18] sm:$0xff]  ;;  %v1008_v43 = vld [vmem:[%s1976_s4 + $0x10] sm:$0xff] }
 0xd92   :  { %1232 = vmatmul.mubr.msk.f32.vlgmr.msra.gmra.mxu0 %vm48_vm0, %v699_v44 }
 0xd93   :  { %1281 = vmatpush3.msra.mxu0 %v925_v33  ;;  %1296 = vmatprep.mubr.msk.f32.mxu0 %vm1477_vm1, %v1475_v4 }
 0xd94   :  { %1282 = vmatprep.subr.mxu0 %v1475_v4 }
 0xd95   :  { %1283 = vmatpush3.msra.mxu0 %v924_v34 }
 0xd96   :  { %1284 = vmatprep.subr.mxu0 %v1475_v4 }
 0xd97   :  { %1285 = vmatpush3.msra.mxu0 %v923_v35 }
 0xd98   :  { %1286 = vmatprep.subr.mxu0 %v1475_v4 }
 0xd99   :  { %1287 = vmatpush3.msra.mxu0 %v922_v36 }
 0xd9a   :  { %1288 = vmatprep.subr.mxu0 %v1475_v4 }
 0xd9b   :  { %1289 = vmatpush3.msra.mxu0 %v921_v1 }
 0xd9c   :  { %1290 = vmatprep.subr.mxu0 %v1475_v4 }
 0xd9d   :  { %1291 = vmatpush3.msra.mxu0 %v920_v2 }
 0xd9e   :  { %1292 = vmatprep.subr.mxu0 %v1475_v4 }
 0xd9f   :  { %1293 = vmatpush3.msra.mxu0 %v919_v3 }
 0xda0   :  { %1294 = vmatprep.subr.mxu0 %v1475_v4 }
 0xda1   :  { %1295 = vmatpush3.msra.mxu0 %v918_v8 }
 0xda2   :  { %1334 = vmatprep.subr.mxu0 %v1475_v4 }
 0xe52   :  { %v772_v45 = vpop.f32.mrf.mxu0 }
 0xe53   :  { %v777_v50 = vadd.f32 %v1230_v49, %v772_v45  ;;  %v1007_v49 = vld [vmem:[%s1976_s4 + $0x8] sm:$0xff] }
 0xe54   :  { %v774_v47 = vpop.f32.mrf.mxu0 }
 0xe55   :  { %v778_v0 = vadd.f32 %v1231_v46, %v774_v47  ;;  %v1233_v51 = vmul.f32 -1.442695, %v777_v50  ;;  %v1006_v50 = vld [vmem:[%s1976_s4] sm:$0xff] }
 0xe57   :  { %1429 = vtanh.f32 %v778_v0  ;;  %v1234_v61 = vmul.f32 -1.442695, %v778_v0 }
 0xe58   :  { %1431 = vpow2.f32 %v1233_v51  ;;  %v1106_v51 = vld [vmem:[%s1978_s6 + $0x38] sm:$0xff] }
 0xe64   :  { %v1430_v48 = vpop.eup %1429 }
 0xe65   :  { %794 = vrot.lane.b32.xlu0 %v1430_v48, %s1476_s16  ;;  %v1432_v52 = vpop.eup %1431 }
 0xe66   :  { %v785_v53 = vadd.f32 1.0, %v1432_v52  ;;  %v1105_v52 = vld [vmem:[%s1978_s6 + $0x30] sm:$0xff] }
 0xe68   :  { %1433 = vrcp.f32 %v785_v53  ;;  %v1104_v53 = vld [vmem:[%s1978_s6 + $0x28] sm:$0xff] }
 0xe75   :  { %v1434_v54 = vpop.eup %1433 }
 0xe76   :  { %v792_v57 = vmul.f32 %v1434_v54, %v693_v37  ;;  %v1014_v37 = vld [vmem:[%s1976_s4 + $0x40] sm:$0xff] }
 0xed7   :  { %v795_v55 = vpop.permute.xlu0 %794 }
 0xed8   :  { %v797_v56 = vmul.f32 %v1434_v54, %v795_v55  ;;  %v1103_v54 = vld [vmem:[%s1978_s6 + $0x20] sm:$0xff]  ;;  %v1102_v55 = vld [vmem:[%s1978_s6 + $0x18] sm:$0xff] }
 0xeda   :  { %799 = vrot.lane.b32.xlu1 %v797_v56, %s1476_s16  ;;  %v1101_v56 = vld [vmem:[%s1978_s6 + $0x10] sm:$0xff] }
 0xf4c   :  { %v800_v58 = vpop.permute.xlu1 %799 }
 0xf4d   :  { %v802_v59 = vadd.f32 %v800_v58, %v792_v57  ;;  %v1240_v57 = vld [vmem:[%s1975_s3] ss:$0 sm:$0xff] }
 0xf4f   :  { %1435 = vtanh.f32 %v802_v59 }
 0xf50   :  { %1437 = vpow2.f32 %v1234_v61  ;;  %v1100_v61 = vld [vmem:[%s1978_s6 + $0x8] sm:$0xff] }
 0xf5c   :  { %v1436_v60 = vpop.eup %1435 }
 0xf5d   :  { %805 = vrot.lane.b32.xlu0 %v1436_v60, %s1476_s16  ;;  %v1438_v62 = vpop.eup %1437 }
 0xf5e   :  { %v786_v63 = vadd.f32 1.0, %v1438_v62  ;;  %v1099_v62 = vld [vmem:[%s1978_s6] sm:$0xff]  ;;  %s1453_s6 = scalar_lea.vmem %s1196_s21, 128 }
 0xf5f   :  { %p1454_p0 = scmp.ne.s32.totalorder %s1196_s21, %s1453_s6  ;;  %p1459_p2 = scmp.lt.s32.totalorder %s1453_s6, %s1453_s6 }
 0xf60   :  { %1439 = vrcp.f32 %v786_v63  ;;  %v1242_v63 = vld [vmem:[%s1977_s5] ss:$0 sm:$0xff] }
 0xf61   :  { %p1460_p3 = por %p1459_p2, %p1458_p1 }
 0xf63   :  { %p1461_p4 = pnand %p1460_p3, %p1454_p0 }
 0xf6d   :  { %v1440_v17 = vpop.eup %1439 }
 0xfcf   :  { %v806_v18 = vpop.permute.xlu0 %805 }
 0xfd0   :  { %v808_v19 = vmul.f32 %v1440_v17, %v806_v18 }
 0xfd2   :  { %1237 = vmatmul.mubr.msk.f32.vlgmr.msra.gmra.mxu1 %vm48_vm0, %v808_v19 }
 0xfd3   :  { %1331 = vmatprep.mubr.msk.f32.mxu1 %vm1477_vm1, %v1475_v4  ;;  %1300 = vmatpush3.msra.mxu1 %v1021_v9 }
 0xfd4   :  { %1301 = vmatprep.subr.mxu1 %v1475_v4 }
 0xfd5   :  { %1302 = vmatpush3.msra.mxu1 %v1020_v10 }
 0xfd6   :  { %1303 = vmatprep.subr.mxu1 %v1475_v4 }
 0xfd7   :  { %1304 = vmatpush3.msra.mxu1 %v1019_v11 }
 0xfd8   :  { %1305 = vmatprep.subr.mxu1 %v1475_v4 }
 0xfd9   :  { %1306 = vmatpush3.msra.mxu1 %v1018_v12 }
 0xfda   :  { %1307 = vmatprep.subr.mxu1 %v1475_v4 }
 0xfdb   :  { %1308 = vmatpush3.msra.mxu1 %v1017_v13 }
 0xfdc   :  { %1309 = vmatprep.subr.mxu1 %v1475_v4 }
 0xfdd   :  { %1310 = vmatpush3.msra.mxu1 %v1016_v14 }
 0xfde   :  { %1311 = vmatprep.subr.mxu1 %v1475_v4 }
 0xfdf   :  { %1312 = vmatpush3.msra.mxu1 %v1015_v16 }
 0xfe0   :  { %1313 = vmatprep.subr.mxu1 %v1475_v4 }
 0xfe1   :  { %1314 = vmatpush3.msra.mxu1 %v1014_v37 }
 0xfe2   :  { %1315 = vmatprep.subr.mxu1 %v1475_v4 }
 0xfe3   :  { %1316 = vmatpush3.msra.mxu1 %v1013_v38 }
 0xfe4   :  { %1317 = vmatprep.subr.mxu1 %v1475_v4 }
 0xfe5   :  { %1318 = vmatpush3.msra.mxu1 %v1012_v39 }
 0xfe6   :  { %1319 = vmatprep.subr.mxu1 %v1475_v4 }
 0xfe7   :  { %1320 = vmatpush3.msra.mxu1 %v1011_v40 }
 0xfe8   :  { %1321 = vmatprep.subr.mxu1 %v1475_v4 }
 0xfe9   :  { %1322 = vmatpush3.msra.mxu1 %v1010_v41 }
 0xfea   :  { %1323 = vmatprep.subr.mxu1 %v1475_v4 }
 0xfeb   :  { %1324 = vmatpush3.msra.mxu1 %v1009_v42 }
 0xfec   :  { %1325 = vmatprep.subr.mxu1 %v1475_v4 }
 0xfed   :  { %1326 = vmatpush3.msra.mxu1 %v1008_v43 }
 0xfee   :  { %1327 = vmatprep.subr.mxu1 %v1475_v4 }
 0xfef   :  { %1328 = vmatpush3.msra.mxu1 %v1007_v49 }
 0xff0   :  { %1329 = vmatprep.subr.mxu1 %v1475_v4 }
 0xff1   :  { %1330 = vmatpush3.msra.mxu1 %v1006_v50 }
0x1092   :  { %v881_v20 = vpop.f32.mrf.mxu1 }
0x1093   :  { %v886_v26 = vadd.f32 %v1235_v25, %v881_v20  ;;  %v1243_v20 = vld [vmem:[%s1979_s7] ss:$0 sm:$0xff] }
0x1094   :  { %v883_v22 = vpop.f32.mrf.mxu1 }
0x1095   :  { %v1816_v23 = vadd.f32 %v1236_v21, %v883_v22  ;;  %v1238_v27 = vmul.f32 -1.442695, %v886_v26 }
0x1097   :  { %1441 = vtanh.f32 %v1816_v23  ;;  %v1239_v44 = vmul.f32 -1.442695, %v1816_v23 }
0x1098   :  { %1443 = vpow2.f32 %v1238_v27 }
0x10a4   :  { %v1442_v24 = vpop.eup %1441 }
0x10a5   :  { %903 = vrot.lane.b32.xlu1 %v1442_v24, %s1476_s16  ;;  %v1444_v28 = vpop.eup %1443 }
0x10a6   :  { %v894_v29 = vadd.f32 1.0, %v1444_v28 }
0x10a8   :  { %1445 = vrcp.f32 %v894_v29 }
0x10b5   :  { %v1446_v30 = vpop.eup %1445 }
0x10b6   :  { %v901_v5 = vmul.f32 %v1446_v30, %v802_v59 }
0x1117   :  { %v904_v31 = vpop.permute.xlu1 %903 }
0x1118   :  { %v906_v32 = vmul.f32 %v1446_v30, %v904_v31 }
0x111a   :  { %908 = vrot.lane.b32.xlu0 %v906_v32, %s1476_s16 }
0x118c   :  { %v909_v6 = vpop.permute.xlu0 %908 }
0x118d   :  { %v911_v7 = vadd.f32 %v909_v6, %v901_v5 }
0x118f   :  { %1447 = vtanh.f32 %v911_v7 }
0x1190   :  { %1449 = vpow2.f32 %v1239_v44 }
0x119c   :  { %v1448_v15 = vpop.eup %1447 }
0x119d   :  { %914 = vrot.lane.b32.xlu1 %v1448_v15, %s1476_s16  ;;  %v1450_v45 = vpop.eup %1449 }
0x119e   :  { %v895_v46 = vadd.f32 1.0, %v1450_v45 }
0x11a0   :  { %1451 = vrcp.f32 %v895_v46 }
0x11ad   :  { %v1452_v47 = vpop.eup %1451 }
0x120f   :  { %v915_v0 = vpop.permute.xlu1 %914 }
0x1210   :  { %v917_v48 = vmul.f32 %v1452_v47, %v915_v0 }
0x1212   :  { %1297 = vmatmul.mubr.msk.f32.vlgmr.msra.gmra.mxu0 %vm48_vm0, %v917_v48 }
0x1213   :  { %1350 = vmatprep.mubr.msk.f32.mxu0 %vm1477_vm1, %v1475_v4  ;;  %1335 = vmatpush3.msra.mxu0 %v1106_v51 }
0x1214   :  { %1336 = vmatprep.subr.mxu0 %v1475_v4 }
0x1215   :  { %1337 = vmatpush3.msra.mxu0 %v1105_v52 }
0x1216   :  { %1338 = vmatprep.subr.mxu0 %v1475_v4 }
0x1217   :  { %1339 = vmatpush3.msra.mxu0 %v1104_v53 }
0x1218   :  { %1340 = vmatprep.subr.mxu0 %v1475_v4 }
0x1219   :  { %1341 = vmatpush3.msra.mxu0 %v1103_v54 }
0x121a   :  { %1342 = vmatprep.subr.mxu0 %v1475_v4 }
0x121b   :  { %1343 = vmatpush3.msra.mxu0 %v1102_v55 }
0x121c   :  { %1344 = vmatprep.subr.mxu0 %v1475_v4 }
0x121d   :  { %1345 = vmatpush3.msra.mxu0 %v1101_v56 }
0x121e   :  { %1346 = vmatprep.subr.mxu0 %v1475_v4 }
0x121f   :  { %1347 = vmatpush3.msra.mxu0 %v1100_v61 }
0x1220   :  { %1348 = vmatprep.subr.mxu0 %v1475_v4 }
0x1221   :  { %1349 = vmatpush3.msra.mxu0 %v1099_v62 }
0x12d2   :  { %v1002_v58 = vpop.f32.mrf.mxu0 }
0x12d3   :  { %v1003_v59 = vadd.f32 %v1240_v57, %v1002_v58 }
0x12d4   :  { %v1298_v60 = vpop.f32.mrf.mxu0 }
0x12d5   :  { %1332 = vmatmul.mubr.f32.vlgmr.msra.gmra.mxu1 %v1003_v59 }
0x1395   :  { %v1095_v17 = vpop.f32.mrf.mxu1 }
0x1396   :  { %v1096_v18 = vadd.f32 %v1242_v63, %v1095_v17 }
0x1397   :  { %v1333_v19 = vpop.f32.mrf.mxu1 }
0x1398   :  { %1351 = vmatmul.mubr.msk.f32.vlgmr.msra.gmra.mxu0 %vm48_vm0, %v1096_v18 }
0x1458   :  { %v1183_v4 = vpop.f32.mrf.mxu0 }
0x1459   :  { %v1184_v21 = vadd.f32 %v1243_v20, %v1183_v4 }
0x145a   :  { %v1352_v22 = vpop.f32.mrf.mxu0 }
0x145b   :  { %1188 = vst.msk [vmem:[#allocation2] sm:$0xff] %vm1187_vm2, %v1184_v21 }
0x145c   :  { %1464 = shalt.err (!%p1461_p4)
}
0x145d   :  { %1198 = dma.vmem_to_hbm [thread:$0]  %s1196_s21, 128, %s1980_s8, [#allocation3]  }
0x145e   :  { %1473 = dma.done.wait [#allocation3], 128  }
0x145f   :  { %1474 = vsyncadd [#allocation3], 4294967168 }
0x1460   :  { %1202 = vsyncpa [#allocation3], 1 }

</bundles_post_ra>
